<compile_context>
chip_gen: v7x
topology: tpu7x:2x2x1
jax: 0.10.0
libtpu: 0.0.40
codegen_flags: <defaults>
</compile_context>

<pallas_src>
import jax
import jax.numpy as jnp
from jax.experimental import pallas as pl
from jax.experimental.pallas import tpu as pltpu


def _linear_kernel(x_ref, w_ref, b_ref, o_ref):
    # MXU matmul (f32 accumulation) + VPU bias add, all in VMEM.
    acc = jnp.dot(x_ref[...], w_ref[...], preferred_element_type=jnp.float32)
    o_ref[...] = (acc + b_ref[...]).astype(o_ref.dtype)


def select_operations_forward(enc_outputs, h, c, weight, bias):
    """Pallas equivalent of SelectOperations.forward.

    enc_outputs: (B, S, d_model) float32
    weight:      (d_model, operations) float32   (transpose of PyTorch's (out, in))
    bias:        (operations,) float32
    returns (output, h, c) with output of shape (B, S, operations)
    """
    B, S, K = enc_outputs.shape
    N = weight.shape[1]
    M = B * S

    # Row tile: multiple of 8 (f32 sublane).  Large (4096) to amortize per-step overhead;
    # shrink to a rounded-up M when the whole problem is smaller than one tile.
    TM_MAX = 4096
    TM = min(TM_MAX, ((M + 7) // 8) * 8)
    grid_m = pl.cdiv(M, TM)  # ragged last tile handled by Pallas (masked writeback)

    x2d = enc_outputs.reshape(M, K)   # free reshape, same HBM layout
    b2d = bias.reshape(1, N)

    cost = pl.CostEstimate(
        flops=2 * M * K * N,
        transcendentals=0,
        bytes_accessed=4 * (M * K + K * N + N + M * N),
    )

    out2d = pl.pallas_call(
        _linear_kernel,
        out_shape=jax.ShapeDtypeStruct((M, N), enc_outputs.dtype),
        grid_spec=pltpu.PrefetchScalarGridSpec(
            num_scalar_prefetch=0,
            grid=(grid_m,),
            in_specs=[
                # x: one (TM, K) row tile per grid step -> pipelined HBM->VMEM DMA.
                pl.BlockSpec((TM, K), lambda i: (i, 0)),
                # weight/bias: same block every step -> resident in VMEM.
                pl.BlockSpec((K, N), lambda i: (0, 0)),
                pl.BlockSpec((1, N), lambda i: (0, 0)),
            ],
            out_specs=pl.BlockSpec((TM, N), lambda i: (i, 0)),
        ),
        compiler_params=pltpu.CompilerParams(
            dimension_semantics=("parallel",),
        ),
        cost_estimate=cost,
    )(x2d, weight, b2d)

    out = out2d.reshape(B, S, N)  # free reshape
    # h, c pass through unchanged (module returns them untouched).
    return out, h, c


if __name__ == "__main__":
    # Small shapes consistent with the module's forward.
    B, S, d_model, operations = 2, 8, 32, 16
    hidden = 32

    key = jax.random.PRNGKey(0)
    k_x, k_h, k_c, k_w, k_b = jax.random.split(key, 5)

    enc_outputs = jax.random.normal(k_x, (B, S, d_model), dtype=jnp.float32)
    h = jax.random.normal(k_h, (1, B, hidden), dtype=jnp.float32)
    c = jax.random.normal(k_c, (1, B, hidden), dtype=jnp.float32)

    # Deterministic parameter init mimicking nn.Linear defaults (uniform in +/- 1/sqrt(fan_in)).
    bound = 1.0 / jnp.sqrt(jnp.float32(d_model))
    weight = jax.random.uniform(
        k_w, (d_model, operations), minval=-bound, maxval=bound, dtype=jnp.float32
    )
    bias = jax.random.uniform(
        k_b, (operations,), minval=-bound, maxval=bound, dtype=jnp.float32
    )

    out, h_out, c_out = select_operations_forward(enc_outputs, h, c, weight, bias)
    jax.block_until_ready((out, h_out, c_out))

    # Cross-check against plain JAX reference.
    ref = enc_outputs.reshape(B * S, d_model) @ weight + bias
    assert jnp.allclose(out.reshape(B * S, operations), ref, atol=1e-5, rtol=1e-5)
    assert out.shape == (B, S, operations)
    assert h_out.shape == h.shape and c_out.shape == c.shape
    assert jnp.array_equal(h_out, h) and jnp.array_equal(c_out, c)

    print("KERNEL_OK")
</pallas_src>

<mosaic_0001>
module attributes {stable_mosaic.version = 11 : i64} {
  func.func @_linear_kernel(%arg0: i32, %arg1: memref<16x32xf32, #tpu.memory_space<vmem>>, %arg2: memref<32x16xf32, #tpu.memory_space<vmem>>, %arg3: memref<1x16xf32, #tpu.memory_space<vmem>>, %arg4: memref<16x16xf32, #tpu.memory_space<vmem>>) attributes {dimension_semantics = [#tpu.dimension_semantics<parallel>], iteration_bounds = array<i64: 1>, scalar_prefetch = 0 : i64, scratch_operands = 0 : i64, tpu.core_type = #tpu.core_type<tc>, window_params = [{transform_indices = @transform_0, window_bounds = array<i64: 16, 32>}, {pipeline_mode = #tpu.pipeline_mode<synchronous>, transform_indices = @transform_1, window_bounds = array<i64: 32, 16>}, {pipeline_mode = #tpu.pipeline_mode<synchronous>, transform_indices = @transform_2, window_bounds = array<i64: 1, 16>}, {transform_indices = @transform_3, window_bounds = array<i64: 16, 16>}]} {
    %c0 = arith.constant 0 : index
    %c0_0 = arith.constant 0 : index
    %0 = vector.load %arg1[%c0, %c0_0] : memref<16x32xf32, #tpu.memory_space<vmem>>, vector<16x32xf32>
    %c0_1 = arith.constant 0 : index
    %c0_2 = arith.constant 0 : index
    %1 = vector.load %arg2[%c0_1, %c0_2] : memref<32x16xf32, #tpu.memory_space<vmem>>, vector<32x16xf32>
    %cst = arith.constant dense<0.000000e+00> : vector<16x16xf32>
    %2 = tpu.matmul %0, %1, %cst {dimension_numbers = #tpu.dot_dimension_numbers<[1], [0], [0], [1], [0, 0, 1, 1], [], []>} : vector<16x32xf32>, vector<32x16xf32>, vector<16x16xf32> -> vector<16x16xf32>
    %c0_3 = arith.constant 0 : index
    %c0_4 = arith.constant 0 : index
    %3 = vector.load %arg3[%c0_3, %c0_4] : memref<1x16xf32, #tpu.memory_space<vmem>>, vector<1x16xf32>
    %4 = vector.broadcast %3 : vector<1x16xf32> to vector<16x16xf32>
    %5 = arith.addf %2, %4 : vector<16x16xf32>
    %c0_5 = arith.constant 0 : index
    %c0_6 = arith.constant 0 : index
    %6 = vector.load %arg4[%c0_5, %c0_6] : memref<16x16xf32, #tpu.memory_space<vmem>>, vector<16x16xf32>
    tpu.vector_store %arg4[%c0_5, %c0_6], %5 {strides = array<i32>} : memref<16x16xf32, #tpu.memory_space<vmem>>, vector<16x16xf32>,
    return
  }
  func.func @transform_0(%arg0: i32) -> (i32, i32) {
    %c0_i32 = arith.constant 0 : i32
    %c0_i32_0 = arith.constant 0 : i32
    return %arg0, %c0_i32 : i32, i32
  }
  func.func @transform_1(%arg0: i32) -> (i32, i32) {
    %c0_i32 = arith.constant 0 : i32
    %c0_i32_0 = arith.constant 0 : i32
    %c0_i32_1 = arith.constant 0 : i32
    return %c0_i32, %c0_i32_0 : i32, i32
  }
  func.func @transform_2(%arg0: i32) -> (i32, i32) {
    %c0_i32 = arith.constant 0 : i32
    %c0_i32_0 = arith.constant 0 : i32
    %c0_i32_1 = arith.constant 0 : i32
    return %c0_i32, %c0_i32_0 : i32, i32
  }
  func.func @transform_3(%arg0: i32) -> (i32, i32) {
    %c0_i32 = arith.constant 0 : i32
    %c0_i32_0 = arith.constant 0 : i32
    return %arg0, %c0_i32 : i32, i32
  }
}

</mosaic_0001>

<bundles_post_ra>
// kernel: tpu_custom_call.1
= control target key start
LH: loop header
LB: loop body
LE: loop exit
PB: predicated region body
PF: predicated region fallthrough
CT: control target
= control target key end

     0   :  { %vm28_vm0 = vcmask 261120   ;;  %s240_s0 = inlined_call_operand.vmem [shape: f32[16,32], index: 0, kind: input, shape index: {}]   ;;  %s241_s1 = inlined_call_operand.vmem [shape: f32[32,16], index: 1, kind: input, shape index: {}]   ;;  %s242_s2 = inlined_call_operand.vmem [shape: f32[1,16], index: 2, kind: input, shape index: {}]   ;;  %s243_s3 = inlined_call_operand.hbm [shape: f32[16,16], index: 3, kind: output, shape index: {}]  }
   0x1   :  { %v17_v0 = vld [vmem:[%s241_s1] sm:$0xff]  ;;  %v18_v1 = vld [vmem:[%s241_s1 + $0x8] sm:$0xff]  ;;  %v19_v2 = vld [vmem:[%s241_s1 + $0x10] sm:$0xff] }
   0x2   :  { %v149_v3 = vpack.c.bf16 %v18_v1, %v17_v0  ;;  %v20_v4 = vld [vmem:[%s241_s1 + $0x18] sm:$0xff]  ;;  %v15_v5 = vld [vmem:[%s240_s0] sm:$0xff] }
   0x3   :  { %v153_v6 = vpack.c.bf16 %v20_v4, %v19_v2  ;;  %146 = vmatprep.mubr.msk.f32.mxu0 %vm28_vm0, %v15_v5 }
   0x4   :  { %8 = vsyncpa [#allocation3], 0  ;;  %150 = vmatprep.subr.bf16.mxu0 %v149_v3  ;;  %v16_v7 = vld [vmem:[%s240_s0 + $0x8] sm:$0xff]  ;;  %v129_v8 = vld [vmem:[%s242_s2] ss:$0 sm:$0xff]  ;;  %s184_s1 = smov [#allocation2]  }
   0x5   :  { %152 = vmatpush3.bf16.msra.mxu0 %v149_v3  ;;  %s118_s26 = sshll.u32 %s184_s1, 4  ;;  %vm110_vm1 = vcmask 130048   ;;  %s119_s26 = int_to_ptr.vmem [resolvable:$true] %s118_s26 }
   0x6   :  { %154 = vmatprep.subr.bf16.mxu0 %v153_v6  ;;  %s160_s27 = scalar_lea.vmem %s119_s26, 256  ;;  %p165_p1 = scmp.lt.s32.totalorder %s119_s26, %s119_s26 }
   0x7   :  { %p161_p0 = scmp.ne.s32.totalorder %s119_s26, %s160_s27  ;;  %p166_p2 = scmp.lt.s32.totalorder %s160_s27, %s160_s27 }
   0x9   :  { %156 = vmatpush3.bf16.msra.mxu0 %v153_v6  ;;  %p167_p3 = por %p166_p2, %p165_p1 }
   0xb   :  { %p168_p4 = pnand %p167_p3, %p161_p0 }
   0xc   :  { %147 = vmatmul.mubr.msk.f32.vlgmr.msra.gmra.mrb[0].mxu0 %vm28_vm0, %v16_v7 }
  0xdf   :  { %v148_v9 = vpop.f32.mrb[0].mxu0 }
  0xe0   :  { %v107_v10 = vadd.f32 %v148_v9, %v129_v8  ;;  %v101_v11 = vpop.f32.mrb[1].mxu0 }
  0xe1   :  { %v102_v12 = vadd.f32 %v129_v8, %v101_v11 }
  0xe2   :  { %112 = vst.msk [vmem:[#allocation2 + $0x8] sm:$0xff] %vm110_vm1, %v107_v10 }
  0xe3   :  { %111 = vst.msk [vmem:[#allocation2] sm:$0xff] %vm110_vm1, %v102_v12 }
  0xe4   :  { %171 = shalt.err (!%p168_p4)
}
  0xe5   :  { %s172_s2 = scalar_lea.hbm %s243_s3, 256 }
  0xe6   :  { %p173_p5 = scmp.ne.s32.totalorder %s243_s3, %s172_s2  ;;  %p176_p6 = scmp.lt.u32.totalorder %s172_s2, %s243_s3 }
  0xe8   :  { %p178_p7 = pnand %p176_p6, %p173_p5 }
  0xea   :  { %181 = shalt.err (!%p178_p7)
}
  0xeb   :  { %s185_s6 = smov 128   ;;  %s186_s7 = smov 8  }
  0xec   :  { %124 = dma.vmem_to_hbm [thread:$0]  %s119_s26, 256, %s243_s3, [#allocation3], %s185_s6, %s185_s6, %s186_s7  }
  0xed   :  { %182 = dma.done.wait [#allocation3], 256  }
  0xee   :  { %183 = vsyncadd [#allocation3], 4294967040 }
  0xef   :  { %128 = vsyncpa [#allocation3], 1 }

</bundles_post_ra>
